<compile_context>
chip_gen: v6e
topology: v6e:2x2x1
jax: 0.10.0
libtpu: 0.0.40
codegen_flags: <defaults>
</compile_context>

<pallas_src>
import jax
import jax.numpy as jnp
from jax.experimental import pallas as pl
from jax.experimental.pallas import tpu as pltpu


def _round_up(x, m):
    return ((x + m - 1) // m) * m


# ---------------------------------------------------------------------------
# Kernels
# ---------------------------------------------------------------------------
def _mlm_kernel_2d(x_ref, w_ref, b_ref, o_ref):
    # Whole reduction in one step (tk == Dp): single MXU pass, bias in epilogue.
    o_ref[...] = (
        jnp.dot(x_ref[...], w_ref[...], preferred_element_type=jnp.float32)
        + b_ref[...]
    ).astype(o_ref.dtype)


def _mlm_kernel_3d(x_ref, w_ref, b_ref, o_ref):
    # K-tiled reduction. The f32 output block is resident across k (its
    # index_map ignores k), so it doubles as the accumulator: no VMEM scratch,
    # and the bias add is folded into the k==0 init for free.
    k = pl.program_id(2)

    @pl.when(k == 0)
    def _init():
        o_ref[...] = jnp.broadcast_to(b_ref[...], o_ref.shape)

    o_ref[...] += jnp.dot(
        x_ref[...], w_ref[...], preferred_element_type=jnp.float32
    )


# ---------------------------------------------------------------------------
# One-time parameter preparation (do at init time, NOT per forward)
# ---------------------------------------------------------------------------
def prepare_mlm_params(w, b, *, tn=1024, tk=1024, small_d_threshold=2048):
    """w: [V, D] nn.Linear weight, b: [V] bias.

    Returns the weight pre-transposed to [Dp, Vp], zero-padded to tile
    multiples and cast to bf16, plus the bias padded to [1, Vp] in f32.
    """
    V, D = w.shape
    # Keep tn / tk multiples of 256: v6e/v7x MXUs are 256x256 (v5e is fine too).
    tk = min(tk, _round_up(D, 256))
    tn = min(tn, _round_up(V, 256))
    Dp = _round_up(D, tk)
    if Dp <= small_d_threshold:
        tk = Dp  # single reduction step -> forward uses a 2D grid (no K axis)
    Vp = _round_up(V, tn)

    w2d = w.T.astype(jnp.bfloat16)            # [D, V]
    if (Dp, Vp) != (D, V):
        w2d = jnp.pad(w2d, ((0, Dp - D), (0, Vp - V)))
    b2d = b.astype(jnp.float32).reshape(1, V)
    if Vp != V:
        b2d = jnp.pad(b2d, ((0, 0), (0, Vp - V)))

    return dict(w=w2d, b=b2d, V=V, D=D, Vp=Vp, Dp=Dp, tn=tn, tk=tk)


# ---------------------------------------------------------------------------
# Forward
# ---------------------------------------------------------------------------
def mlm_forward(x, params, *, tm=512, out_dtype=jnp.float32):
    """x: [B, S, D] -> logits [B, S, V] = x @ W^T + b."""
    B, S, D = x.shape
    assert D == params["D"], (D, params["D"])
    V, Vp, Dp = params["V"], params["Vp"], params["Dp"]
    tn, tk = params["tn"], params["tk"]
    w2d, b2d = params["w"], params["b"]

    M = B * S
    # Round M to 16 so the bf16 x operand packs full (16, 128) vregs.
    tm = min(tm, _round_up(M, 16))
    Mp = _round_up(M, tm)

    x2d = x.reshape(M, D).astype(jnp.bfloat16)
    if (Mp, Dp) != (M, D):
        x2d = jnp.pad(x2d, ((0, Mp - M), (0, Dp - D)))

    n_v, n_m, n_k = Vp // tn, Mp // tm, Dp // tk

    # The K-tiled kernel accumulates directly into an f32 output block.
    kernel_out_dtype = out_dtype if n_k == 1 else jnp.float32
    out_itemsize = jnp.dtype(kernel_out_dtype).itemsize

    # VMEM budget: double-buffered x / W / out tiles + bias. Cap at 48 MiB so
    # the same config stays legal on v7x (64 MiB/TC) and v5e/v6e (128 MiB).
    vmem_need = (2 * tm * tk * 2 + 2 * tk * tn * 2
                 + 2 * tm * tn * out_itemsize + 2 * tn * 4)
    vmem_limit = int(min(48 * 2**20, max(2 * vmem_need, 16 * 2**20)))

    cost = pl.CostEstimate(
        flops=2 * M * D * V,
        transcendentals=0,
        bytes_accessed=int(
            Mp * Dp * 2 * n_v          # x streamed once per vocab stripe
            + Dp * Vp * 2 * n_m        # W streamed once per M stripe
            + Vp * 4 * n_m             # bias re-reads
            + Mp * Vp * out_itemsize   # output write
        ),
    )

    if n_k == 1:
        grid = (n_v, n_m)
        kernel = _mlm_kernel_2d
        in_specs = [
            pl.BlockSpec((tm, tk), lambda j, i: (i, 0)),   # x tile
            pl.BlockSpec((tk, tn), lambda j, i: (0, j)),   # W^T tile
            pl.BlockSpec((1, tn), lambda j, i: (0, j)),    # bias tile
        ]
        out_specs = pl.BlockSpec((tm, tn), lambda j, i: (i, j))
        dims = ("parallel", "parallel")
    else:
        grid = (n_v, n_m, n_k)                             # vocab / M / K-last
        kernel = _mlm_kernel_3d
        in_specs = [
            pl.BlockSpec((tm, tk), lambda j, i, k: (i, k)),   # x tile
            pl.BlockSpec((tk, tn), lambda j, i, k: (k, j)),   # W^T tile
            pl.BlockSpec((1, tn), lambda j, i, k: (0, j)),    # bias tile
        ]
        out_specs = pl.BlockSpec((tm, tn), lambda j, i, k: (i, j))
        dims = ("parallel", "parallel", "arbitrary")

    out2d = pl.pallas_call(
        kernel,
        out_shape=jax.ShapeDtypeStruct((Mp, Vp), kernel_out_dtype),
        grid_spec=pltpu.PrefetchScalarGridSpec(
            num_scalar_prefetch=0,
            grid=grid,
            in_specs=in_specs,
            out_specs=out_specs,
        ),
        compiler_params=pltpu.CompilerParams(
            dimension_semantics=dims,
            vmem_limit_bytes=vmem_limit,
        ),
        cost_estimate=cost,
    )(x2d, w2d, b2d)

    out = out2d[:M, :V].reshape(B, S, V)
    return out.astype(out_dtype)


if __name__ == "__main__":
    # Small shapes consistent with the module: d_model=32, vocab_size=128,
    # input [batch=2, seq=8, d_model=32].
    B, S, D, V = 2, 8, 32, 128

    key = jax.random.PRNGKey(0)
    kx, kw, kb = jax.random.split(key, 3)

    x = jax.random.normal(kx, (B, S, D), dtype=jnp.float32)
    # Deterministic "nn.Linear" parameters: weight [V, D], bias [V].
    w = jax.random.normal(kw, (V, D), dtype=jnp.float32) * 0.02
    b = jax.random.normal(kb, (V,), dtype=jnp.float32) * 0.02

    # One-time parameter preparation (transpose + bf16 + pad), then forward.
    params = prepare_mlm_params(w, b)
    out = mlm_forward(x, params)
    out = jax.block_until_ready(out)

    # Reference check in plain JAX (x @ W^T + b). Tolerance loosened slightly
    # because the kernel uses bf16 operands (f32 accumulation).
    ref = jnp.einsum("bsd,vd->bsv", x, w) + b
    assert out.shape == (B, S, V)
    assert out.dtype == jnp.float32
    assert jnp.allclose(out, ref, atol=2e-2, rtol=2e-2), float(
        jnp.max(jnp.abs(out - ref))
    )

    print("KERNEL_OK")
</pallas_src>

<mosaic_0001>
module attributes {stable_mosaic.version = 11 : i64} {
  func.func @_mlm_kernel_2d(%arg0: i32, %arg1: i32, %arg2: memref<16x256xbf16, #tpu.memory_space<vmem>>, %arg3: memref<256x256xbf16, #tpu.memory_space<vmem>>, %arg4: memref<1x256xf32, #tpu.memory_space<vmem>>, %arg5: memref<16x256xf32, #tpu.memory_space<vmem>>) attributes {dimension_semantics = [#tpu.dimension_semantics<parallel>, #tpu.dimension_semantics<parallel>], iteration_bounds = array<i64: 1, 1>, scalar_prefetch = 0 : i64, scratch_operands = 0 : i64, tpu.core_type = #tpu.core_type<tc>, window_params = [{transform_indices = @transform_0, window_bounds = array<i64: 16, 256>}, {transform_indices = @transform_1, window_bounds = array<i64: 256, 256>}, {transform_indices = @transform_2, window_bounds = array<i64: 1, 256>}, {transform_indices = @transform_3, window_bounds = array<i64: 16, 256>}]} {
    %c0 = arith.constant 0 : index
    %c0_0 = arith.constant 0 : index
    %0 = vector.load %arg2[%c0, %c0_0] : memref<16x256xbf16, #tpu.memory_space<vmem>>, vector<16x256xbf16>
    %c0_1 = arith.constant 0 : index
    %c0_2 = arith.constant 0 : index
    %1 = vector.load %arg3[%c0_1, %c0_2] : memref<256x256xbf16, #tpu.memory_space<vmem>>, vector<256x256xbf16>
    %cst = arith.constant dense<0.000000e+00> : vector<16x256xf32>
    %2 = tpu.matmul %0, %1, %cst {dimension_numbers = #tpu.dot_dimension_numbers<[1], [0], [0], [1], [0, 0, 1, 1], [], []>} : vector<16x256xbf16>, vector<256x256xbf16>, vector<16x256xf32> -> vector<16x256xf32>
    %c0_3 = arith.constant 0 : index
    %c0_4 = arith.constant 0 : index
    %3 = vector.load %arg4[%c0_3, %c0_4] : memref<1x256xf32, #tpu.memory_space<vmem>>, vector<1x256xf32>
    %4 = vector.broadcast %3 : vector<1x256xf32> to vector<16x256xf32>
    %5 = arith.addf %2, %4 : vector<16x256xf32>
    %c0_5 = arith.constant 0 : index
    %c0_6 = arith.constant 0 : index
    %6 = vector.load %arg5[%c0_5, %c0_6] : memref<16x256xf32, #tpu.memory_space<vmem>>, vector<16x256xf32>
    tpu.vector_store %arg5[%c0_5, %c0_6], %5 {strides = array<i32>} : memref<16x256xf32, #tpu.memory_space<vmem>>, vector<16x256xf32>,
    return
  }
  func.func @transform_0(%arg0: i32, %arg1: i32) -> (i32, i32) {
    %c0_i32 = arith.constant 0 : i32
    %c0_i32_0 = arith.constant 0 : i32
    return %arg1, %c0_i32 : i32, i32
  }
  func.func @transform_1(%arg0: i32, %arg1: i32) -> (i32, i32) {
    %c0_i32 = arith.constant 0 : i32
    %c0_i32_0 = arith.constant 0 : i32
    return %c0_i32, %arg0 : i32, i32
  }
  func.func @transform_2(%arg0: i32, %arg1: i32) -> (i32, i32) {
    %c0_i32 = arith.constant 0 : i32
    %c0_i32_0 = arith.constant 0 : i32
    return %c0_i32, %arg0 : i32, i32
  }
  func.func @transform_3(%arg0: i32, %arg1: i32) -> (i32, i32) {
    %c0_i32 = arith.constant 0 : i32
    return %arg1, %arg0 : i32, i32
  }
}

</mosaic_0001>

<bundles_post_ra>
// kernel: tpu_custom_call.1
= control target key start
LH: loop header
LB: loop body
LE: loop exit
PB: predicated region body
PF: predicated region fallthrough
CT: control target
= control target key end

     0   :  { %8 = vsyncpa [#allocation3], 0  ;;  %s521_s0 = inlined_call_operand.hbm [shape: bf16[16,256], index: 0, kind: input, shape index: {}]   ;;  %s522_s1 = inlined_call_operand.hbm [shape: bf16[256,256], index: 1, kind: input, shape index: {}]   ;;  %s523_s2 = inlined_call_operand.vmem [shape: f32[1,256], index: 2, kind: input, shape index: {}]   ;;  %s524_s3 = inlined_call_operand.hbm [shape: f32[16,256], index: 3, kind: output, shape index: {}]  }
   0x1   :  { %9 = vsyncpa [#allocation6], 0 }
   0x2   :  { %10 = vsyncpa [#allocation4], 0  ;;  %s482_s12 = smov [#allocation2]  }
   0x3   :  { %s16_s13 = sshll.u32 %s482_s12, 4  ;;  %s17_s13 = int_to_ptr.vmem [resolvable:$true] %s16_s13 }
   0x4   :  { %s424_s14 = scalar_lea.vmem %s17_s13, 256  ;;  %p429_p1 = scmp.lt.s32.totalorder %s17_s13, %s17_s13 }
   0x5   :  { %p425_p0 = scmp.ne.s32.totalorder %s17_s13, %s424_s14  ;;  %p430_p2 = scmp.lt.s32.totalorder %s424_s14, %s424_s14 }
   0x7   :  { %p431_p3 = por %p430_p2, %p429_p1 }
   0x9   :  { %p432_p4 = pnand %p431_p3, %p425_p0 }
   0xb   :  { %435 = shalt.err (!%p432_p4)
}
   0xc   :  { %s483_s15 = smov 128   ;;  %s484_s16 = smov 8  }
   0xd   :  { %22 = dma.hbm_to_vmem [thread:$0]  %s521_s0, 256, %s17_s13, [#allocation3], %s483_s15, %s483_s15, %s484_s16  }
   0xe   :  { %s485_s19 = smov [#allocation5]  }
   0xf   :  { %s28_s20 = sshll.u32 %s485_s19, 4  ;;  %s29_s20 = int_to_ptr.vmem [resolvable:$true] %s28_s20 }
  0x10   :  { %s444_s21 = scalar_lea.vmem %s29_s20, 4096  ;;  %p449_p6 = scmp.lt.s32.totalorder %s29_s20, %s29_s20 }
  0x11   :  { %p445_p5 = scmp.ne.s32.totalorder %s29_s20, %s444_s21  ;;  %p450_p7 = scmp.lt.s32.totalorder %s444_s21, %s444_s21 }
  0x13   :  { %p451_p8 = por %p450_p7, %p449_p6 }
  0x15   :  { %p452_p9 = pnand %p451_p8, %p445_p5 }
  0x17   :  { %455 = shalt.err (!%p452_p9)
}
  0x18   :  { %34 = dma.hbm_to_vmem [thread:$0]  %s522_s1, 4096, %s29_s20, [#allocation6], %s483_s15, %s483_s15, %s484_s16  }
  0x19   :  { %476 = dma.done.wait [#allocation3], 256  }
  0x1a   :  { %477 = vsyncadd [#allocation3], 4294967040 }
  0x1b   :  { %478 = dma.done.wait [#allocation6], 4096  }
  0x1c   :  { %479 = vsyncadd [#allocation6], 4294963200  ;;  %v365_v0 = vld [vmem:[#allocation5 + $0x74] ss:$8 sps:$4 sm:$0xff]   ;;  %v367_v1 = vld [vmem:[#allocation5 + $0x70] ss:$8 sps:$4 sm:$0xff]   ;;  %v79_v34 = vlaneseq }
  0x1d   :  { %259 = vmatprep.subr.bf16.mxu0 %v365_v0  ;;  %v368_v2 = vld [vmem:[#allocation5 + $0x64] ss:$8 sps:$4 sm:$0xff]   ;;  %v370_v3 = vld [vmem:[#allocation5 + $0x60] ss:$8 sps:$4 sm:$0xff]   ;;  %v371_v4 = vld [vmem:[#allocation5 + $0x54] ss:$8 sps:$4 sm:$0xff]  }
  0x1e   :  { %260 = vmatpush1.bf16.msra.mxu0 %v367_v1  ;;  %v373_v5 = vld [vmem:[#allocation5 + $0x50] ss:$8 sps:$4 sm:$0xff]   ;;  %v374_v6 = vld [vmem:[#allocation5 + $0x44] ss:$8 sps:$4 sm:$0xff]   ;;  %v376_v7 = vld [vmem:[#allocation5 + $0x40] ss:$8 sps:$4 sm:$0xff]  }
  0x1f   :  { %261 = vmatprep.subr.bf16.mxu0 %v368_v2  ;;  %v377_v8 = vld [vmem:[#allocation5 + $0x34] ss:$8 sps:$4 sm:$0xff]   ;;  %v379_v9 = vld [vmem:[#allocation5 + $0x30] ss:$8 sps:$4 sm:$0xff]   ;;  %v380_v10 = vld [vmem:[#allocation5 + $0x24] ss:$8 sps:$4 sm:$0xff]  }
  0x20   :  { %v382_v11 = vld [vmem:[#allocation5 + $0x20] ss:$8 sps:$4 sm:$0xff]   ;;  %v383_v12 = vld [vmem:[#allocation5 + $0x14] ss:$8 sps:$4 sm:$0xff]   ;;  %v385_v14 = vld [vmem:[#allocation5 + $0x10] ss:$8 sps:$4 sm:$0xff]  }
  0x21   :  { %v415_v13 = vld [vmem:[#allocation2 + $0x4] ss:$8 sps:$4 sm:$0xff]   ;;  %v386_v15 = vld [vmem:[#allocation5 + $0x4] ss:$8 sps:$4 sm:$0xff]   ;;  %v388_v16 = vld [vmem:[#allocation5] ss:$8 sps:$4 sm:$0xff]  }
  0x22   :  { %262 = vmatpush1.bf16.msra.mxu0 %v370_v3  ;;  %291 = vmatprep.mubr.bf16.mxu0 %v415_v13  ;;  %v389_v17 = vld [vmem:[#allocation5 + $0xf4] ss:$8 sps:$4 sm:$0xff]   ;;  %v391_v18 = vld [vmem:[#allocation5 + $0xf0] ss:$8 sps:$4 sm:$0xff]   ;;  %v392_v19 = vld [vmem:[#allocation5 + $0xe4] ss:$8 sps:$4 sm:$0xff]  }
  0x23   :  { %263 = vmatprep.subr.bf16.mxu0 %v371_v4  ;;  %v394_v20 = vld [vmem:[#allocation5 + $0xe0] ss:$8 sps:$4 sm:$0xff]   ;;  %v395_v21 = vld [vmem:[#allocation5 + $0xd4] ss:$8 sps:$4 sm:$0xff]   ;;  %v397_v22 = vld [vmem:[#allocation5 + $0xd0] ss:$8 sps:$4 sm:$0xff]  }
  0x24   :  { %v398_v23 = vld [vmem:[#allocation5 + $0xc4] ss:$8 sps:$4 sm:$0xff]   ;;  %v400_v24 = vld [vmem:[#allocation5 + $0xc0] ss:$8 sps:$4 sm:$0xff]   ;;  %v401_v25 = vld [vmem:[#allocation5 + $0xb4] ss:$8 sps:$4 sm:$0xff]  }
  0x25   :  { %v403_v26 = vld [vmem:[#allocation5 + $0xb0] ss:$8 sps:$4 sm:$0xff]   ;;  %v404_v27 = vld [vmem:[#allocation5 + $0xa4] ss:$8 sps:$4 sm:$0xff]   ;;  %v406_v28 = vld [vmem:[#allocation5 + $0xa0] ss:$8 sps:$4 sm:$0xff]  }
  0x26   :  { %264 = vmatpush1.bf16.msra.mxu0 %v373_v5  ;;  %v407_v29 = vld [vmem:[#allocation5 + $0x94] ss:$8 sps:$4 sm:$0xff]   ;;  %v409_v30 = vld [vmem:[#allocation5 + $0x90] ss:$8 sps:$4 sm:$0xff]   ;;  %v410_v31 = vld [vmem:[#allocation5 + $0x84] ss:$8 sps:$4 sm:$0xff]  }
  0x27   :  { %265 = vmatprep.subr.bf16.mxu0 %v374_v6  ;;  %v412_v32 = vld [vmem:[#allocation5 + $0x80] ss:$8 sps:$4 sm:$0xff]   ;;  %v413_v33 = vld [vmem:[#allocation2] ss:$8 sps:$4 sm:$0xff]   ;;  %v80_v35 = vshrl.u32 %v79_v34, 7  ;;  %s486_s24 = smov [#allocation7]  }
  0x28   :  { %v77_v37 = vld [vmem:[%s523_s2] sm:$0x3]  ;;  %s311_s25 = sshll.u32 %s486_s24, 4  ;;  %s312_s25 = int_to_ptr.vmem [resolvable:$true] %s311_s25 }
  0x29   :  { %v81_v36 = vsub.s32 0, %v80_v35  ;;  %v85_v38 = vsub.s32 1, %v80_v35  ;;  %s456_s26 = scalar_lea.vmem %s312_s25, 512  ;;  %p461_p11 = scmp.lt.s32.totalorder %s312_s25, %s312_s25 }
  0x2a   :  { %266 = vmatpush1.bf16.msra.mxu0 %v376_v7  ;;  %p457_p10 = scmp.ne.s32.totalorder %s312_s25, %s456_s26  ;;  %p462_p12 = scmp.lt.s32.totalorder %s456_s26, %s456_s26 }
  0x2b   :  { %267 = vmatprep.subr.bf16.mxu0 %v377_v8  ;;  %v82_v39 = vrot.slane %v77_v37, %v81_v36  ;;  %v86_v40 = vrot.slane %v77_v37, %v85_v38 }
  0x2c   :  { %p463_p13 = por %p462_p12, %p461_p11 }
  0x2e   :  { %268 = vmatpush1.bf16.msra.mxu0 %v379_v9  ;;  %p464_p0 = pnand %p463_p13, %p457_p10 }
  0x2f   :  { %269 = vmatprep.subr.bf16.mxu0 %v380_v10 }
  0x32   :  { %270 = vmatpush1.bf16.msra.mxu0 %v382_v11 }
  0x33   :  { %271 = vmatprep.subr.bf16.mxu0 %v383_v12 }
  0x36   :  { %272 = vmatpush1.bf16.msra.mxu0 %v385_v14 }
  0x37   :  { %273 = vmatprep.subr.bf16.mxu0 %v386_v15 }
  0x3a   :  { %274 = vmatpush1.bf16.msra.mxu0 %v388_v16 }
  0x3b   :  { %275 = vmatprep.subr.bf16.mxu0 %v389_v17 }
  0x3e   :  { %276 = vmatpush2.bf16.msra.mxu0 %v391_v18 }
  0x3f   :  { %277 = vmatprep.subr.bf16.mxu0 %v392_v19 }
  0x42   :  { %278 = vmatpush2.bf16.msra.mxu0 %v394_v20 }
  0x43   :  { %279 = vmatprep.subr.bf16.mxu0 %v395_v21 }
  0x46   :  { %280 = vmatpush2.bf16.msra.mxu0 %v397_v22 }
  0x47   :  { %281 = vmatprep.subr.bf16.mxu0 %v398_v23 }
  0x4a   :  { %282 = vmatpush2.bf16.msra.mxu0 %v400_v24 }
  0x4b   :  { %283 = vmatprep.subr.bf16.mxu0 %v401_v25 }
  0x4e   :  { %284 = vmatpush2.bf16.msra.mxu0 %v403_v26 }
  0x4f   :  { %285 = vmatprep.subr.bf16.mxu0 %v404_v27 }
  0x52   :  { %286 = vmatpush2.bf16.msra.mxu0 %v406_v28 }
  0x53   :  { %287 = vmatprep.subr.bf16.mxu0 %v407_v29 }
  0x56   :  { %288 = vmatpush2.bf16.msra.mxu0 %v409_v30 }
  0x57   :  { %289 = vmatprep.subr.bf16.mxu0 %v410_v31 }
  0x5a   :  { %290 = vmatpush2.bf16.msra.mxu0 %v412_v32 }
  0x5d   :  { %292 = vmatmul.mubr.bf16.vlgmr.msra.gmra.mxu0 %v413_v33 }
 0x11d   :  { %v293_v41 = vpop.f32.mrf.mxu0 }
 0x11e   :  { %v294_v42 = vadd.f32 %v293_v41, %v82_v39 }
 0x11f   :  { %v295_v43 = vpop.f32.mrf.mxu0 }
 0x120   :  { %302 = vst [vmem:[#allocation7] sm:$0xff] %v294_v42  ;;  %v296_v44 = vadd.f32 %v295_v43, %v86_v40 }
 0x121   :  { %v297_v45 = vpop.f32.mrf.mxu0 }
 0x122   :  { %303 = vst [vmem:[#allocation7 + $0x8] sm:$0xff] %v296_v44  ;;  %v298_v46 = vadd.f32 %v297_v45, %v82_v39 }
 0x123   :  { %v299_v47 = vpop.f32.mrf.mxu0 }
 0x124   :  { %304 = vst [vmem:[#allocation7 + $0x10] sm:$0xff] %v298_v46  ;;  %v300_v48 = vadd.f32 %v299_v47, %v86_v40 }
 0x126   :  { %305 = vst [vmem:[#allocation7 + $0x18] sm:$0xff] %v300_v48 }
 0x127   :  { %467 = shalt.err (!%p464_p0)
}
 0x128   :  { %s487_s2 = smov 256   ;;  %s488_s27 = smov 16  }
 0x129   :  { %317 = dma.vmem_to_hbm [thread:$0]  %s312_s25, 512, %s524_s3, [#allocation4], %s487_s2, %s487_s2, %s488_s27  }
 0x12a   :  { %480 = dma.done.wait [#allocation4], 512  }
 0x12b   :  { %481 = vsyncadd [#allocation4], 4294966784 }
 0x12c   :  { %321 = vsyncpa [#allocation3], 1 }
 0x12d   :  { %322 = vsyncpa [#allocation6], 1 }
 0x12e   :  { %323 = vsyncpa [#allocation4], 1 }

</bundles_post_ra>
